<compile_context>
chip_gen: v7x
topology: tpu7x:2x2x1
jax: 0.10.0
libtpu: 0.0.40
codegen_flags: <defaults>
</compile_context>

<pallas_src>
import math

import jax
import jax.numpy as jnp
import numpy as np
from jax import lax
from jax.experimental import pallas as pl
from jax.experimental.pallas import tpu as pltpu


def _primary_capsule_kernel(x_ref, w_ref, b_ref, g_ref, gt_ref, bsel_ref, o_ref):
    """One TB-batch block.

    x_ref:    (CK, L)   activations, L = TB*W lanes (matmul dtype)
    w_ref:    (UD, CK)  all capsule units' conv weights (VMEM-resident)
    b_ref:    (UD, 1)   all capsule units' conv biases  (VMEM-resident)
    g_ref:    (L, TB)   lane-group selector   g[b*W+w, b'] = (b == b')
    gt_ref:   (TB, L)   its transpose (lane broadcast back)
    bsel_ref: (UD, UD)  sublane-group selector bsel[u*D+d, u'*D+d'] = (u == u')
    o_ref:    (UD, L)   squashed capsules, kernel-native layout
    """
    x = x_ref[...]
    w = w_ref[...]

    # All U Conv1d units and TB batch elements fused into one MXU matmul over
    # the (in_channels * in_units) contraction dim; accumulate in f32.
    y = jnp.dot(w, x, preferred_element_type=jnp.float32) + b_ref[...]   # (UD, L)

    # Squash over each capsule vector (PyTorch dim=2 == the (d, w) block of a
    # given (unit, batch) pair) WITHOUT leaving the native layout: segmented
    # sums via small selector matmuls (the MXU has plenty of slack; the XLU
    # stays idle — no reshapes/transposes in the body).
    ysq = y * y
    # per-(row, batch-element) sums over the W node lanes:          (UD, TB)
    z = jnp.dot(ysq, g_ref[...], preferred_element_type=jnp.float32)
    # per-(unit, batch) sum over the D capsule rows, broadcast back to those D
    # rows in the same matmul:                                      (UD, TB)
    mag_sq = jnp.dot(bsel_ref[...], z, preferred_element_type=jnp.float32)

    # |s| / (1 + |s|^2) on the small (UD, TB) tile (rsqrt -> EUP).
    scale = mag_sq * lax.rsqrt(mag_sq) / (1.0 + mag_sq)
    # Broadcast the per-(unit, batch) scale across the W node lanes: (UD, L)
    scale_full = jnp.dot(scale, gt_ref[...], preferred_element_type=jnp.float32)

    o_ref[...] = y * scale_full


def _pick_block_batch(n, w, ck, ud, x_itemsize, budget_bytes=16 * 2**20):
    """Batch elements per grid step.  TB*W is a multiple of 128 (lane-dense
    stores) unless a single step already covers the whole batch."""
    tb0 = 128 // math.gcd(w, 128)          # smallest TB with TB*W % 128 == 0
    k = max(1, 512 // (tb0 * w))           # aim for ~512 lanes per step

    def est_bytes(tb):
        l = tb * w
        return (2 * ck * l * x_itemsize            # x block (double-buffered)
                + 2 * ud * l * 4                   # out block (double-buffered)
                + ud * ck * x_itemsize + ud * 4    # weights + bias (resident)
                + 2 * l * tb * 4 + ud * ud * 4)    # selectors (resident)

    while k > 1 and est_bytes(tb0 * k) > budget_bytes:
        k //= 2
    return min(tb0 * k, n)


def primary_capsule_forward(x, w_all, b_all, *, matmul_dtype=jnp.bfloat16,
                            block_batch=None):
    """x: (N, C, K, W); w_all: (U, D, C*K); b_all: (U, D, 1) — all float32.

    Returns (N, U, D*W) float32 — the PyTorch module's output layout.
    """
    N, C, K, W = x.shape
    U, D, CK = w_all.shape
    assert CK == C * K
    UD = U * D

    x_itemsize = jnp.dtype(matmul_dtype).itemsize
    tb = block_batch if block_batch is not None else _pick_block_batch(
        N, W, CK, UD, x_itemsize)
    n_pad = -(-N // tb) * tb               # pad batch up to a multiple of TB
    L = tb * W
    num_steps = n_pad // tb

    # Arrange activations ONCE as a (CK, N*W) slab: contraction dim on
    # sublanes, (batch, node) on lanes, so every grid step is one wide matmul.
    x2 = jnp.transpose(x.reshape(N, CK, W), (1, 0, 2)).reshape(CK, N * W)
    if n_pad != N:
        x2 = jnp.pad(x2, ((0, 0), (0, (n_pad - N) * W)))
    x2 = x2.astype(matmul_dtype)

    w_fused = w_all.reshape(UD, CK).astype(matmul_dtype)
    b_fused = b_all.reshape(UD, 1).astype(jnp.float32)

    # Selector matrices for the in-layout squash reductions, built once on the
    # host; constant index_maps keep them VMEM-resident across all steps.
    g_np = np.kron(np.eye(tb, dtype=np.float32), np.ones((W, 1), np.float32))
    bsel_np = np.kron(np.eye(U, dtype=np.float32), np.ones((D, D), np.float32))
    g = jnp.asarray(g_np)                                   # (L, TB)
    gt = jnp.asarray(np.ascontiguousarray(g_np.T))          # (TB, L)
    bsel = jnp.asarray(bsel_np)                              # (UD, UD)

    y = pl.pallas_call(
        _primary_capsule_kernel,
        out_shape=jax.ShapeDtypeStruct((UD, n_pad * W), jnp.float32),
        grid_spec=pltpu.PrefetchScalarGridSpec(
            num_scalar_prefetch=0,
            grid=(num_steps,),
            in_specs=[
                pl.BlockSpec((CK, L), lambda i: (0, i)),
                # Constant index maps: DMA'd once, stay resident in VMEM.
                pl.BlockSpec((UD, CK), lambda i: (0, 0)),
                pl.BlockSpec((UD, 1), lambda i: (0, 0)),
                pl.BlockSpec((L, tb), lambda i: (0, 0)),
                pl.BlockSpec((tb, L), lambda i: (0, 0)),
                pl.BlockSpec((UD, UD), lambda i: (0, 0)),
            ],
            out_specs=pl.BlockSpec((UD, L), lambda i: (0, i)),
        ),
        compiler_params=pltpu.CompilerParams(
            dimension_semantics=("parallel",),
            vmem_limit_bytes=32 * 1024 * 1024,
        ),
    )(x2, w_fused, b_fused, g, gt, bsel)

    # One fused XLA relayout from the kernel-native (UD, N*W) layout back to
    # the PyTorch torch.stack(dim=1).view(N, U, -1) layout.
    out = y.reshape(U, D, n_pad, W)[:, :, :N]
    return jnp.transpose(out, (2, 0, 1, 3)).reshape(N, U, D * W)


def primary_capsule_reference(x, w_all, b_all):
    """Pure-JAX reference mirroring the PyTorch forward (float32)."""
    N, C, K, W = x.shape
    U, D, CK = w_all.shape
    xf = x.reshape(N, C * K, W)
    y = jnp.einsum('udc,ncw->nudw', w_all, xf) + b_all[None]      # (N, U, D, W)
    u = y.reshape(N, U, D * W)
    mag_sq = jnp.sum(u ** 2, axis=2, keepdims=True)
    mag = jnp.sqrt(mag_sq)
    return mag_sq / (1.0 + mag_sq) * (u / mag)


if __name__ == "__main__":
    # Shapes consistent with the module: x is
    # (batch, in_channels, in_units, num_nodes).
    batch, in_channels, in_units, num_nodes = 2, 4, 8, 16
    num_units, capsule_dimensions = 4, 8

    key = jax.random.PRNGKey(0)
    kx, kw, kb = jax.random.split(key, 3)
    x = jax.random.normal(
        kx, (batch, in_channels, in_units, num_nodes), jnp.float32)

    # Deterministic parameter init (Conv1d-style uniform bound 1/sqrt(fan_in)).
    fan_in = in_channels * in_units
    bound = 1.0 / np.sqrt(fan_in)
    # Conv weight (D, C, K, 1) flattened over (C, K) -> (U, D, C*K)
    w_all = jax.random.uniform(
        kw, (num_units, capsule_dimensions, fan_in), jnp.float32, -bound, bound)
    b_all = jax.random.uniform(
        kb, (num_units, capsule_dimensions, 1), jnp.float32, -bound, bound)

    ref = primary_capsule_reference(x, w_all, b_all)

    # float32 matmul path: tight check against the PyTorch-equivalent reference.
    out_f32 = jax.block_until_ready(
        primary_capsule_forward(x, w_all, b_all, matmul_dtype=jnp.float32))
    np.testing.assert_allclose(np.asarray(out_f32), np.asarray(ref),
                               rtol=5e-4, atol=1e-5)

    # bfloat16 matmul path (default; MXU-native on v6e/v7x): loose tolerance.
    out_bf16 = jax.block_until_ready(primary_capsule_forward(x, w_all, b_all))
    np.testing.assert_allclose(np.asarray(out_bf16), np.asarray(ref),
                               rtol=5e-2, atol=5e-3)

    assert out_bf16.shape == (batch, num_units,
                              capsule_dimensions * num_nodes)
    print("KERNEL_OK")
</pallas_src>

<mosaic_0001>
module attributes {stable_mosaic.version = 11 : i64} {
  func.func @_primary_capsule_kernel(%arg0: i32, %arg1: memref<32x32xf32, #tpu.memory_space<vmem>>, %arg2: memref<32x32xf32, #tpu.memory_space<vmem>>, %arg3: memref<32x1xf32, #tpu.memory_space<vmem>>, %arg4: memref<32x2xf32, #tpu.memory_space<vmem>>, %arg5: memref<2x32xf32, #tpu.memory_space<vmem>>, %arg6: memref<32x32xf32, #tpu.memory_space<vmem>>, %arg7: memref<32x32xf32, #tpu.memory_space<vmem>>) attributes {dimension_semantics = [#tpu.dimension_semantics<parallel>], iteration_bounds = array<i64: 1>, scalar_prefetch = 0 : i64, scratch_operands = 0 : i64, tpu.core_type = #tpu.core_type<tc>, window_params = [{transform_indices = @transform_0, window_bounds = array<i64: 32, 32>}, {pipeline_mode = #tpu.pipeline_mode<synchronous>, transform_indices = @transform_1, window_bounds = array<i64: 32, 32>}, {pipeline_mode = #tpu.pipeline_mode<synchronous>, transform_indices = @transform_2, window_bounds = array<i64: 32, 1>}, {pipeline_mode = #tpu.pipeline_mode<synchronous>, transform_indices = @transform_3, window_bounds = array<i64: 32, 2>}, {pipeline_mode = #tpu.pipeline_mode<synchronous>, transform_indices = @transform_4, window_bounds = array<i64: 2, 32>}, {pipeline_mode = #tpu.pipeline_mode<synchronous>, transform_indices = @transform_5, window_bounds = array<i64: 32, 32>}, {transform_indices = @transform_6, window_bounds = array<i64: 32, 32>}]} {
    %c0 = arith.constant 0 : index
    %c0_0 = arith.constant 0 : index
    %0 = vector.load %arg1[%c0, %c0_0] : memref<32x32xf32, #tpu.memory_space<vmem>>, vector<32x32xf32>
    %c0_1 = arith.constant 0 : index
    %c0_2 = arith.constant 0 : index
    %1 = vector.load %arg2[%c0_1, %c0_2] : memref<32x32xf32, #tpu.memory_space<vmem>>, vector<32x32xf32>
    %cst = arith.constant dense<0.000000e+00> : vector<32x32xf32>
    %2 = tpu.matmul %1, %0, %cst {dimension_numbers = #tpu.dot_dimension_numbers<[1], [0], [0], [1], [0, 0, 1, 1], [], []>} : vector<32x32xf32>, vector<32x32xf32>, vector<32x32xf32> -> vector<32x32xf32>
    %c0_3 = arith.constant 0 : index
    %c0_4 = arith.constant 0 : index
    %3 = vector.load %arg3[%c0_3, %c0_4] : memref<32x1xf32, #tpu.memory_space<vmem>>, vector<32x1xf32>
    %4 = vector.broadcast %3 : vector<32x1xf32> to vector<32x32xf32>
    %5 = arith.addf %2, %4 : vector<32x32xf32>
    %6 = arith.mulf %5, %5 : vector<32x32xf32>
    %c0_5 = arith.constant 0 : index
    %c0_6 = arith.constant 0 : index
    %7 = vector.load %arg4[%c0_5, %c0_6] : memref<32x2xf32, #tpu.memory_space<vmem>>, vector<32x2xf32>
    %cst_7 = arith.constant dense<0.000000e+00> : vector<32x2xf32>
    %8 = tpu.matmul %6, %7, %cst_7 {dimension_numbers = #tpu.dot_dimension_numbers<[1], [0], [0], [1], [0, 0, 1, 1], [], []>} : vector<32x32xf32>, vector<32x2xf32>, vector<32x2xf32> -> vector<32x2xf32>
    %c0_8 = arith.constant 0 : index
    %c0_9 = arith.constant 0 : index
    %9 = vector.load %arg6[%c0_8, %c0_9] : memref<32x32xf32, #tpu.memory_space<vmem>>, vector<32x32xf32>
    %cst_10 = arith.constant dense<0.000000e+00> : vector<32x2xf32>
    %10 = tpu.matmul %9, %8, %cst_10 {dimension_numbers = #tpu.dot_dimension_numbers<[1], [0], [0], [1], [0, 0, 1, 1], [], []>} : vector<32x32xf32>, vector<32x2xf32>, vector<32x2xf32> -> vector<32x2xf32>
    %11 = math.rsqrt %10 : vector<32x2xf32>
    %12 = arith.mulf %10, %11 : vector<32x2xf32>
    %cst_11 = arith.constant 1.000000e+00 : f32
    %13 = vector.broadcast %cst_11 : f32 to vector<32x2xf32>
    %14 = arith.addf %13, %10 : vector<32x2xf32>
    %15 = arith.divf %12, %14 : vector<32x2xf32>
    %c0_12 = arith.constant 0 : index
    %c0_13 = arith.constant 0 : index
    %16 = vector.load %arg5[%c0_12, %c0_13] : memref<2x32xf32, #tpu.memory_space<vmem>>, vector<2x32xf32>
    %cst_14 = arith.constant dense<0.000000e+00> : vector<32x32xf32>
    %17 = tpu.matmul %15, %16, %cst_14 {dimension_numbers = #tpu.dot_dimension_numbers<[1], [0], [0], [1], [0, 0, 1, 1], [], []>} : vector<32x2xf32>, vector<2x32xf32>, vector<32x32xf32> -> vector<32x32xf32>
    %18 = arith.mulf %5, %17 : vector<32x32xf32>
    %c0_15 = arith.constant 0 : index
    %c0_16 = arith.constant 0 : index
    %19 = vector.load %arg7[%c0_15, %c0_16] : memref<32x32xf32, #tpu.memory_space<vmem>>, vector<32x32xf32>
    tpu.vector_store %arg7[%c0_15, %c0_16], %18 {strides = array<i32>} : memref<32x32xf32, #tpu.memory_space<vmem>>, vector<32x32xf32>,
    return
  }
  func.func @transform_0(%arg0: i32) -> (i32, i32) {
    %c0_i32 = arith.constant 0 : i32
    %c0_i32_0 = arith.constant 0 : i32
    return %c0_i32, %arg0 : i32, i32
  }
  func.func @transform_1(%arg0: i32) -> (i32, i32) {
    %c0_i32 = arith.constant 0 : i32
    %c0_i32_0 = arith.constant 0 : i32
    %c0_i32_1 = arith.constant 0 : i32
    return %c0_i32, %c0_i32_0 : i32, i32
  }
  func.func @transform_2(%arg0: i32) -> (i32, i32) {
    %c0_i32 = arith.constant 0 : i32
    %c0_i32_0 = arith.constant 0 : i32
    %c0_i32_1 = arith.constant 0 : i32
    return %c0_i32, %c0_i32_0 : i32, i32
  }
  func.func @transform_3(%arg0: i32) -> (i32, i32) {
    %c0_i32 = arith.constant 0 : i32
    %c0_i32_0 = arith.constant 0 : i32
    %c0_i32_1 = arith.constant 0 : i32
    return %c0_i32, %c0_i32_0 : i32, i32
  }
  func.func @transform_4(%arg0: i32) -> (i32, i32) {
    %c0_i32 = arith.constant 0 : i32
    %c0_i32_0 = arith.constant 0 : i32
    %c0_i32_1 = arith.constant 0 : i32
    return %c0_i32, %c0_i32_0 : i32, i32
  }
  func.func @transform_5(%arg0: i32) -> (i32, i32) {
    %c0_i32 = arith.constant 0 : i32
    %c0_i32_0 = arith.constant 0 : i32
    %c0_i32_1 = arith.constant 0 : i32
    return %c0_i32, %c0_i32_0 : i32, i32
  }
  func.func @transform_6(%arg0: i32) -> (i32, i32) {
    %c0_i32 = arith.constant 0 : i32
    %c0_i32_0 = arith.constant 0 : i32
    return %c0_i32, %arg0 : i32, i32
  }
}

</mosaic_0001>

<bundles_post_ra>
// kernel: tpu_custom_call.1
= control target key start
LH: loop header
LB: loop body
LE: loop exit
PB: predicated region body
PF: predicated region fallthrough
CT: control target
= control target key end

     0   :  { %11 = vsyncpa [#allocation3], 0  ;;  %s870_s0 = inlined_call_operand.vmem [shape: f32[32,32], index: 0, kind: input, shape index: {}]   ;;  %s871_s1 = inlined_call_operand.vmem [shape: f32[32,32], index: 1, kind: input, shape index: {}]   ;;  %s872_s2 = inlined_call_operand.vmem [shape: f32[32,1], index: 2, kind: input, shape index: {}]   ;;  %s873_s3 = inlined_call_operand.vmem [shape: f32[32,2], index: 3, kind: input, shape index: {}]   ;;  %s874_s4 = inlined_call_operand.vmem [shape: f32[2,32], index: 4, kind: input, shape index: {}]   ;;  %s875_s5 = inlined_call_operand.hbm [shape: f32[32,32], index: 5, kind: input, shape index: {}]   ;;  %s876_s6 = inlined_call_operand.hbm [shape: f32[32,32], index: 6, kind: output, shape index: {}]  }
   0x1   :  { %12 = vsyncpa [#allocation4], 0  ;;  %s713_s21 = smov [#allocation2]   ;;  %s665_s25 = scalar_lea.hbm %s875_s5, 512 }
   0x2   :  { %s28_s22 = sshll.u32 %s713_s21, 4  ;;  %p666_p0 = scmp.ne.s32.totalorder %s875_s5, %s665_s25  ;;  %s29_s22 = int_to_ptr.vmem [resolvable:$true] %s28_s22 }
   0x3   :  { %p669_p1 = scmp.lt.u32.totalorder %s665_s25, %s875_s5 }
   0x5   :  { %p671_p2 = pnand %p669_p1, %p666_p0 }
   0x7   :  { %674 = shalt.err (!%p671_p2)
}
   0x8   :  { %s675_s30 = scalar_lea.vmem %s29_s22, 512  ;;  %p680_p4 = scmp.lt.s32.totalorder %s29_s22, %s29_s22 }
   0x9   :  { %p676_p3 = scmp.ne.s32.totalorder %s29_s22, %s675_s30  ;;  %p681_p5 = scmp.lt.s32.totalorder %s675_s30, %s675_s30 }
   0xb   :  { %p682_p6 = por %p681_p5, %p680_p4 }
   0xd   :  { %p683_p7 = pnand %p682_p6, %p676_p3 }
   0xf   :  { %686 = shalt.err (!%p683_p7)
}
  0x10   :  { %s714_s7 = smov 128   ;;  %s715_s8 = smov 8  }
  0x11   :  { %34 = dma.hbm_to_vmem [thread:$0]  %s875_s5, 512, %s29_s22, [#allocation3], %s714_s7, %s714_s7, %s715_s8  }
  0x12   :  { %709 = dma.done.wait [#allocation3], 512  }
  0x13   :  { %710 = vsyncadd [#allocation3], 4294966784  ;;  %v716_v0 = vmov 0   ;;  %vm70_vm0 = vcmask 261120   ;;  %v38_v1 = vld [vmem:[%s870_s0] sm:$0xff]  ;;  %v39_v2 = vld [vmem:[%s870_s0 + $0x8] sm:$0xff] }
  0x14   :  { %647 = vset.pattern.permute.xlu0 %v716_v0  ;;  %648 = vset.pattern.permute.xlu1 %v716_v0  ;;  %v40_v3 = vld [vmem:[%s870_s0 + $0x10] sm:$0xff]  ;;  %v618_v4 = vpack.c.bf16 %v39_v2, %v38_v1  ;;  %v41_v5 = vld [vmem:[%s870_s0 + $0x18] sm:$0xff]  ;;  %v42_v6 = vld [vmem:[%s871_s1] sm:$0xff]  ;;  %vm408_vm1 = vcmask 1041408   ;;  %vm395_vm2 = vcmask 15360  }
  0x15   :  { %v622_v7 = vpack.c.bf16 %v41_v5, %v40_v3  ;;  %576 = vmatprep.mubr.msk.f32.mxu0 %vm70_vm0, %v42_v6  ;;  %v46_v8 = vld [vmem:[%s872_s2] sm:$0xff]  ;;  %v48_v9 = vld [vmem:[%s872_s2 + $0x10] sm:$0xff]  ;;  %v47_v10 = vld [vmem:[%s872_s2 + $0x8] sm:$0xff] }
  0x16   :  { %619 = vmatprep.subr.bf16.mxu0 %v618_v4  ;;  %52 = vperm.xlu0 %647, %v46_v8   ;;  %v49_v11 = vld [vmem:[%s872_s2 + $0x18] sm:$0xff]  ;;  %v172_v12 = vld [vmem:[%s873_s3] sm:$0xff]  ;;  %v173_v13 = vld [vmem:[%s873_s3 + $0x8] sm:$0xff] }
  0x17   :  { %621 = vmatpush3.bf16.msra.mxu0 %v618_v4  ;;  %62 = vperm.xlu1 %648, %v48_v9   ;;  %v626_v14 = vpack.c.bf16 %v173_v13, %v172_v12  ;;  %v43_v15 = vld [vmem:[%s871_s1 + $0x8] sm:$0xff]  ;;  %v44_v16 = vld [vmem:[%s871_s1 + $0x10] sm:$0xff]  ;;  %v45_v17 = vld [vmem:[%s871_s1 + $0x18] sm:$0xff] }
  0x18   :  { %623 = vmatprep.subr.bf16.mxu0 %v622_v7  ;;  %v174_v18 = vld [vmem:[%s873_s3 + $0x10] sm:$0xff]  ;;  %v175_v19 = vld [vmem:[%s873_s3 + $0x18] sm:$0xff]  ;;  %v273_v37 = vld [vmem:[#allocation2] sm:$0xff] }
  0x19   :  { %627 = vmatprep.subr.bf16.mxu1 %v626_v14  ;;  %v630_v20 = vpack.c.bf16 %v175_v19, %v174_v18  ;;  %v274_v44 = vld [vmem:[#allocation2 + $0x8] sm:$0xff]  ;;  %v275_v45 = vld [vmem:[#allocation2 + $0x10] sm:$0xff]  ;;  %v276_v46 = vld [vmem:[#allocation2 + $0x18] sm:$0xff] }
  0x1a   :  { %57 = vperm.xlu0 %647, %v47_v10   ;;  %629 = vmatpush3.bf16.msra.mxu1 %v626_v14  ;;  %v394_v47 = vld [vmem:[%s874_s4] sm:$0x3]  ;;  %s717_s4 = smov [#allocation5]  }
  0x1b   :  { %625 = vmatpush3.bf16.msra.mxu0 %v622_v7  ;;  %67 = vperm.xlu1 %648, %v49_v11   ;;  %s510_s17 = sshll.u32 %s717_s4, 4  ;;  %s511_s17 = int_to_ptr.vmem [resolvable:$true] %s510_s17 }
  0x1c   :  { %631 = vmatprep.subr.bf16.mxu1 %v630_v20  ;;  %s687_s18 = scalar_lea.vmem %s511_s17, 512  ;;  %p692_p9 = scmp.lt.s32.totalorder %s511_s17, %s511_s17 }
  0x1d   :  { %p688_p8 = scmp.ne.s32.totalorder %s511_s17, %s687_s18  ;;  %p693_p10 = scmp.lt.s32.totalorder %s687_s18, %s687_s18 }
  0x1e   :  { %577 = vmatmul.mubr.msk.f32.vlgmr.msra.gmra.mrb[0].mxu0 %vm70_vm0, %v43_v15  ;;  %633 = vmatpush3.bf16.msra.mxu1 %v630_v20 }
  0x1f   :  { %579 = vmatprep.mubr.msk.f32.mxu0 %vm70_vm0, %v44_v16  ;;  %610 = vmatprep.subr.msk.mxu1 %vm408_vm1, %v394_v47  ;;  %p694_p11 = por %p693_p10, %p692_p9 }
  0x21   :  { %p695_p12 = pnand %p694_p11, %p688_p8 }
  0x22   :  { %580 = vmatmul.mubr.msk.f32.gmra.mrb[2].mxu0 %vm70_vm0, %v45_v17 }
  0x23   :  { %604 = vmatprep.mubr.msk.f32.mxu0 %vm70_vm0, %v273_v37 }
  0x95   :  { %v53_v21 = vpop.permute.xlu0 %52 }
  0x96   :  { %v63_v22 = vpop.permute.xlu1 %62 }
  0x99   :  { %v58_v23 = vpop.permute.xlu0 %57 }
  0x9a   :  { %v68_v28 = vpop.permute.xlu1 %67 }
  0xf1   :  { %v578_v24 = vpop.f32.mrb[0].mxu0 }
  0xf2   :  { %v820_v25 = vadd.f32 %v578_v24, %v58_v23  ;;  %v149_v26 = vpop.f32.mrb[1].mxu0 }
  0xf3   :  { %v822_v27 = vadd.f32 %v149_v26, %v53_v21 }
  0xf4   :  { %v169_v31 = vmul.f32 %v820_v25, %v820_v25 }
  0xf5   :  { %v581_v29 = vpop.f32.mrb[2].mxu0  ;;  %v168_v30 = vmul.f32 %v822_v27, %v822_v27 }
  0xf6   :  { %v828_v32 = vadd.f32 %v581_v29, %v68_v28  ;;  %v159_v33 = vpop.f32.mrb[3].mxu0 }
  0xf7   :  { %v830_v34 = vadd.f32 %v159_v33, %v63_v22  ;;  %590 = vmatprep.mubr.msk.f32.mxu1 %vm70_vm0, %v168_v30 }
  0xf8   :  { %591 = vmatmul.mubr.msk.f32.vlgmr.msra.gmra.mrb[0].mxu1 %vm70_vm0, %v169_v31  ;;  %v171_v36 = vmul.f32 %v828_v32, %v828_v32 }
  0xf9   :  { %v170_v35 = vmul.f32 %v830_v34, %v830_v34  ;;  %611 = vmatpush3.msk.msra.mxu1 %vm408_vm1, %v394_v47 }
  0xfb   :  { %593 = vmatprep.mubr.msk.f32.mxu1 %vm70_vm0, %v170_v35 }
  0xfc   :  { %594 = vmatmul.mubr.msk.f32.gmra.mrb[2].mxu1 %vm70_vm0, %v171_v36 }
 0x1cb   :  { %v592_v38 = vpop.f32.mrb[0].mxu1 }
 0x1cc   :  { %v254_v39 = vpop.f32.mrb[1].mxu1 }
 0x1cd   :  { %v634_v40 = vpack.c.bf16 %v592_v38, %v254_v39 }
 0x1cf   :  { %v595_v41 = vpop.f32.mrb[2].mxu1  ;;  %635 = vmatprep.subr.bf16.mxu0 %v634_v40 }
 0x1d0   :  { %v264_v42 = vpop.f32.mrb[3].mxu1  ;;  %637 = vmatpush3.bf16.msra.mxu0 %v634_v40 }
 0x1d1   :  { %v638_v43 = vpack.c.bf16 %v595_v41, %v264_v42 }
 0x1d3   :  { %639 = vmatprep.subr.bf16.mxu0 %v638_v43 }
 0x1d4   :  { %641 = vmatpush3.bf16.msra.mxu0 %v638_v43 }
 0x1d7   :  { %605 = vmatmul.mubr.msk.f32.vlgmr.msra.gmra.mrb[4].mxu0 %vm70_vm0, %v274_v44 }
 0x1d8   :  { %607 = vmatprep.mubr.msk.f32.mxu0 %vm70_vm0, %v275_v45 }
 0x1db   :  { %608 = vmatmul.mubr.msk.f32.gmra.mrb[6].mxu0 %vm70_vm0, %v276_v46 }
 0x2aa   :  { %v606_v48 = vpop.f32.mrb[4].mxu0 }
 0x2ab   :  { %649 = vrsqrt.f32 %v606_v48  ;;  %v383_v49 = vadd.f32 1.0, %v606_v48  ;;  %v355_v50 = vpop.f32.mrb[5].mxu0 }
 0x2ac   :  { %651 = vrsqrt.f32 %v355_v50  ;;  %v382_v51 = vadd.f32 1.0, %v355_v50 }
 0x2ad   :  { %653 = vrcp.f32 %v383_v49 }
 0x2ae   :  { %655 = vrcp.f32 %v382_v51  ;;  %v609_v52 = vpop.f32.mrb[6].mxu0 }
 0x2af   :  { %657 = vrsqrt.f32 %v609_v52  ;;  %v385_v53 = vadd.f32 1.0, %v609_v52  ;;  %v365_v54 = vpop.f32.mrb[7].mxu0 }
 0x2b0   :  { %659 = vrsqrt.f32 %v365_v54  ;;  %v384_v55 = vadd.f32 1.0, %v365_v54 }
 0x2b1   :  { %661 = vrcp.f32 %v385_v53 }
 0x2b2   :  { %663 = vrcp.f32 %v384_v55 }
 0x2b5   :  { %v650_v56 = vpop.eup %649 }
 0x2b6   :  { %v652_v57 = vpop.eup %651  ;;  %v379_v58 = vmul.f32 %v650_v56, %v606_v48 }
 0x2b7   :  { %v654_v59 = vpop.eup %653  ;;  %v378_v60 = vmul.f32 %v652_v57, %v355_v50 }
 0x2b8   :  { %v656_v61 = vpop.eup %655  ;;  %v389_v1 = vmul.f32 %v654_v59, %v379_v58 }
 0x2b9   :  { %v658_v62 = vpop.eup %657  ;;  %v387_v63 = vmul.f32 %v656_v61, %v378_v60 }
 0x2ba   :  { %v660_v0 = vpop.eup %659  ;;  %v381_v2 = vmul.f32 %v658_v62, %v609_v52 }
 0x2bb   :  { %v662_v3 = vpop.eup %661  ;;  %v380_v4 = vmul.f32 %v660_v0, %v365_v54  ;;  %612 = vmatprep.mubr.msk.f32.mxu1 %vm395_vm2, %v387_v63 }
 0x2bc   :  { %v664_v5 = vpop.eup %663  ;;  %613 = vmatmul.mubr.msk.f32.vlgmr.msra.gmra.mrb[4].mxu1 %vm395_vm2, %v389_v1  ;;  %v393_v7 = vmul.f32 %v662_v3, %v381_v2 }
 0x2bd   :  { %v391_v6 = vmul.f32 %v664_v5, %v380_v4 }
 0x2bf   :  { %615 = vmatprep.mubr.msk.f32.mxu1 %vm395_vm2, %v391_v6 }
 0x2c0   :  { %616 = vmatmul.mubr.msk.f32.gmra.mrb[6].mxu1 %vm395_vm2, %v393_v7 }
 0x38f   :  { %v614_v8 = vpop.f32.mrb[4].mxu1 }
 0x390   :  { %v498_v9 = vmul.f32 %v614_v8, %v820_v25  ;;  %v478_v10 = vpop.f32.mrb[5].mxu1 }
 0x391   :  { %v497_v11 = vmul.f32 %v478_v10, %v822_v27 }
 0x392   :  { %502 = vst.msk [vmem:[#allocation5 + $0x8] sm:$0xff] %vm70_vm0, %v498_v9 }
 0x393   :  { %501 = vst.msk [vmem:[#allocation5] sm:$0xff] %vm70_vm0, %v497_v11  ;;  %v617_v12 = vpop.f32.mrb[6].mxu1 }
 0x394   :  { %v500_v13 = vmul.f32 %v617_v12, %v828_v32  ;;  %v488_v14 = vpop.f32.mrb[7].mxu1 }
 0x395   :  { %v499_v15 = vmul.f32 %v488_v14, %v830_v34 }
 0x396   :  { %504 = vst.msk [vmem:[#allocation5 + $0x18] sm:$0xff] %vm70_vm0, %v500_v13 }
 0x397   :  { %503 = vst.msk [vmem:[#allocation5 + $0x10] sm:$0xff] %vm70_vm0, %v499_v15 }
 0x398   :  { %698 = shalt.err (!%p695_p12)
}
 0x399   :  { %s699_s21 = scalar_lea.hbm %s876_s6, 512 }
 0x39a   :  { %p700_p13 = scmp.ne.s32.totalorder %s876_s6, %s699_s21  ;;  %p703_p0 = scmp.lt.u32.totalorder %s699_s21, %s876_s6 }
 0x39c   :  { %p705_p1 = pnand %p703_p0, %p700_p13 }
 0x39e   :  { %708 = shalt.err (!%p705_p1)
}
 0x39f   :  { %516 = dma.vmem_to_hbm [thread:$0]  %s511_s17, 512, %s876_s6, [#allocation4], %s714_s7, %s714_s7, %s715_s8  }
 0x3a0   :  { %711 = dma.done.wait [#allocation4], 512  }
 0x3a1   :  { %712 = vsyncadd [#allocation4], 4294966784 }
 0x3a2   :  { %520 = vsyncpa [#allocation3], 1 }
 0x3a3   :  { %521 = vsyncpa [#allocation4], 1 }

</bundles_post_ra>
